<compile_context>
chip_gen: v5e
topology: v5e:2x2
jax: 0.10.0
libtpu: 0.0.40
codegen_flags: <defaults>
</compile_context>

<pallas_src>
from functools import partial

import jax
import jax.numpy as jnp
from jax.experimental import pallas as pl
from jax.experimental.pallas import tpu as pltpu

HIDDEN = 512
BN_EPS = 1e-5
LANE = 128

K_TILE_THRESHOLD = 8192   # keep w1 fully resident up to this input_dim
K_TILE = 1024             # K tile when input_dim exceeds the threshold
VMEM_BUDGET = 40 << 20    # working-set target (fits v7x's 64 MiB VMEM)


def _round_up(n, m):
    return (n + m - 1) // m * m


def _k_tiling(d):
    """Return (tk, nk, d_pad) for the reduction (input_dim) axis."""
    if d <= K_TILE_THRESHOLD:
        return d, 1, d
    d_pad = _round_up(d, K_TILE)
    return K_TILE, d_pad // K_TILE, d_pad


def _tile_plan(B, input_dim, c_pad):
    """Choose batch tile / K tile / VMEM limit under a ~40 MiB budget."""
    tk, nk, d_pad = _k_tiling(input_dim)
    # Double-buffered weights + biases (Pallas allocates 2 buffers per input).
    fixed = (2 * tk * HIDDEN * 2          # w1 tiles (bf16)
             + 2 * HIDDEN * c_pad * 2     # w2 (bf16)
             + 2 * (HIDDEN + c_pad) * 4)  # biases (f32)
    # Per batch row: double-buffered x tile (<=f32), out tile (f32), acc row.
    per_row = 2 * tk * 4 + 2 * c_pad * 4 + HIDDEN * 4
    cap = max(16, min(512, ((VMEM_BUDGET - fixed) // per_row) // 16 * 16))

    if B <= 128:
        tile_b = _round_up(B, 16)
    elif B <= 1024:
        tile_b = _round_up((B + 1) // 2, 16)   # >= 2 grid steps (v7x megacore)
    else:
        tile_b = 512
    tile_b = max(16, min(tile_b, cap))

    vmem_bytes = fixed + tile_b * per_row
    vmem_limit = int(max(16 << 20, min(48 << 20, vmem_bytes * 5 // 4 + (2 << 20))))
    return tk, nk, d_pad, tile_b, vmem_limit


def classifier_kernel(x_ref, w1_ref, b1_ref, w2_ref, b2_ref, out_ref, acc_ref):
    k = pl.program_id(1)

    @pl.when(k == 0)
    def _init():
        acc_ref[...] = jnp.zeros_like(acc_ref)

    # Linear 1 partial product (BN already folded into w1/b1). Cast the x tile
    # to bf16 in VMEM -> no extra HBM pass; accumulate in f32.
    acc_ref[...] += jnp.dot(x_ref[...].astype(jnp.bfloat16), w1_ref[...],
                            preferred_element_type=jnp.float32)

    @pl.when(k == pl.num_programs(1) - 1)
    def _finalize():
        h = jnp.maximum(acc_ref[...] + b1_ref[...], 0.0)   # bias + ReLU
        # Dropout(0.2) -> identity in eval mode.
        out_ref[...] = (jnp.dot(h.astype(jnp.bfloat16), w2_ref[...],
                                preferred_element_type=jnp.float32)
                        + b2_ref[...])


@partial(jax.jit, static_argnames=("input_dim", "num_classes"))
def _classifier_forward(x, w1, b1, w2, b2, *, input_dim, num_classes):
    B, D = x.shape
    assert D == input_dim
    d_pad_w, H = w1.shape
    c_pad = w2.shape[1]

    tk, nk, d_pad, tile_b, vmem_limit = _tile_plan(B, input_dim, c_pad)
    assert d_pad == d_pad_w, "params were prepared with a different input_dim"

    b_pad = _round_up(B, tile_b)
    x_in = x
    if (b_pad, d_pad) != (B, D):
        # Only batch rows (and, for huge input_dim, the K tail) get zero-padded;
        # no dtype change, no lane-dim padding.
        x_in = jnp.zeros((b_pad, d_pad), x.dtype).at[:B, :D].set(x)

    grid = (b_pad // tile_b, nk)
    out_pad = pl.pallas_call(
        classifier_kernel,
        out_shape=jax.ShapeDtypeStruct((b_pad, c_pad), jnp.float32),
        grid=grid,
        in_specs=[
            pl.BlockSpec((tile_b, tk), lambda i, k: (i, k)),   # x: batch x K tiles
            pl.BlockSpec((tk, H), lambda i, k: (k, 0)),        # w1 (BN folded)
            pl.BlockSpec((1, H), lambda i, k: (0, 0)),         # b1: resident
            pl.BlockSpec((H, c_pad), lambda i, k: (0, 0)),     # w2: resident
            pl.BlockSpec((1, c_pad), lambda i, k: (0, 0)),     # b2: resident
        ],
        out_specs=pl.BlockSpec((tile_b, c_pad), lambda i, k: (i, 0)),
        scratch_shapes=[pltpu.VMEM((tile_b, HIDDEN), jnp.float32)],
        compiler_params=pltpu.CompilerParams(
            dimension_semantics=("parallel", "arbitrary"),
            vmem_limit_bytes=vmem_limit,
        ),
    )(x_in, w1, b1, w2, b2)

    return out_pad[:B, :num_classes]


def prepare_params(params):
    """One-time (eval mode) preparation: fold BN into Linear 1, cast weights to
    bf16, pad class dim to a multiple of 128 and (if K-tiled) pad input_dim."""
    w1 = params["w1"]
    d, h = w1.shape
    assert h == HIDDEN
    c = params["w2"].shape[1]

    scale = params["gamma"] * jax.lax.rsqrt(params["running_var"] + BN_EPS)
    w1f = (w1 * scale).astype(jnp.bfloat16)
    b1f = ((params["b1"] - params["running_mean"]) * scale
           + params["beta"]).astype(jnp.float32).reshape(1, HIDDEN)

    _, _, d_pad = _k_tiling(d)
    if d_pad != d:
        w1f = jnp.zeros((d_pad, HIDDEN), jnp.bfloat16).at[:d].set(w1f)

    c_pad = _round_up(c, LANE)
    w2p = jnp.zeros((HIDDEN, c_pad), jnp.bfloat16).at[:, :c].set(
        params["w2"].astype(jnp.bfloat16))
    b2p = jnp.zeros((1, c_pad), jnp.float32).at[:, :c].set(
        params["b2"].reshape(1, c).astype(jnp.float32))

    return {"w1": w1f, "b1": b1f, "w2": w2p, "b2": b2p,
            "input_dim": int(d), "num_classes": int(c)}


def classifier_forward(x, prepared):
    return _classifier_forward(
        x, prepared["w1"], prepared["b1"], prepared["w2"], prepared["b2"],
        input_dim=prepared["input_dim"], num_classes=prepared["num_classes"])


def init_params(key, input_dim, num_classes):
    k1, k2, k3, k4 = jax.random.split(key, 4)
    # PyTorch nn.Linear default init: U(-1/sqrt(fan_in), 1/sqrt(fan_in))
    lim1 = 1.0 / jnp.sqrt(input_dim)
    lim2 = 1.0 / jnp.sqrt(HIDDEN)
    return {
        "w1": jax.random.uniform(k1, (input_dim, HIDDEN), jnp.float32, -lim1, lim1),
        "b1": jax.random.uniform(k2, (1, HIDDEN), jnp.float32, -lim1, lim1),
        # BatchNorm1d defaults: gamma=1, beta=0, running_mean=0, running_var=1
        "gamma": jnp.ones((1, HIDDEN), jnp.float32),
        "beta": jnp.zeros((1, HIDDEN), jnp.float32),
        "running_mean": jnp.zeros((1, HIDDEN), jnp.float32),
        "running_var": jnp.ones((1, HIDDEN), jnp.float32),
        "w2": jax.random.uniform(k3, (HIDDEN, num_classes), jnp.float32, -lim2, lim2),
        "b2": jax.random.uniform(k4, (1, num_classes), jnp.float32, -lim2, lim2),
    }


def reference_forward(x, p):
    # Full-precision eval-mode reference (f32).
    h = x @ p["w1"] + p["b1"]
    h = (h - p["running_mean"]) * jax.lax.rsqrt(p["running_var"] + BN_EPS) \
        * p["gamma"] + p["beta"]
    h = jnp.maximum(h, 0.0)
    return h @ p["w2"] + p["b2"]


if __name__ == "__main__":
    key = jax.random.PRNGKey(0)
    k_x, k_p = jax.random.split(key)

    B, input_dim, num_classes = 8, 32, 10
    x = jax.random.normal(k_x, (B, input_dim), jnp.float32)
    params = init_params(k_p, input_dim, num_classes)

    prepared = prepare_params(params)          # one-time weight prep (eval mode)
    out = classifier_forward(x, prepared)
    out = jax.block_until_ready(out)

    ref = reference_forward(x, params)
    assert out.shape == (B, num_classes)
    # bf16 weights/activations with f32 accumulation -> relaxed tolerance vs f32 ref.
    assert jnp.allclose(out, ref, atol=5e-2, rtol=5e-2), "mismatch vs reference"

    print("KERNEL_OK")
</pallas_src>

<mosaic_0001>
module attributes {stable_mosaic.version = 11 : i64} {
  func.func @classifier_kernel(%arg0: i32, %arg1: i32, %arg2: memref<16x32xf32, #tpu.memory_space<vmem>>, %arg3: memref<32x512xbf16, #tpu.memory_space<vmem>>, %arg4: memref<1x512xf32, #tpu.memory_space<vmem>>, %arg5: memref<512x128xbf16, #tpu.memory_space<vmem>>, %arg6: memref<1x128xf32, #tpu.memory_space<vmem>>, %arg7: memref<16x128xf32, #tpu.memory_space<vmem>>, %arg8: memref<16x512xf32, #tpu.memory_space<vmem>>) attributes {dimension_semantics = [#tpu.dimension_semantics<parallel>, #tpu.dimension_semantics<arbitrary>], iteration_bounds = array<i64: 1, 1>, scalar_prefetch = 0 : i64, scratch_operands = 1 : i64, tpu.core_type = #tpu.core_type<tc>, window_params = [{transform_indices = @transform_0, window_bounds = array<i64: 16, 32>}, {transform_indices = @transform_1, window_bounds = array<i64: 32, 512>}, {pipeline_mode = #tpu.pipeline_mode<synchronous>, transform_indices = @transform_2, window_bounds = array<i64: 1, 512>}, {pipeline_mode = #tpu.pipeline_mode<synchronous>, transform_indices = @transform_3, window_bounds = array<i64: 512, 128>}, {pipeline_mode = #tpu.pipeline_mode<synchronous>, transform_indices = @transform_4, window_bounds = array<i64: 1, 128>}, {transform_indices = @transform_5, window_bounds = array<i64: 16, 128>}]} {
    %c0_i32 = arith.constant 0 : i32
    %0 = arith.cmpi eq, %arg1, %c0_i32 : i32
    %1 = arith.extui %0 : i1 to i32
    %c0_i32_0 = arith.constant 0 : i32
    %2 = arith.cmpi ne, %1, %c0_i32_0 : i32
    scf.if %2 {
      %cst_10 = arith.constant 0.000000e+00 : f32
      %13 = vector.broadcast %cst_10 : f32 to vector<16x512xf32>
      %c0_11 = arith.constant 0 : index
      %c0_12 = arith.constant 0 : index
      %14 = vector.load %arg8[%c0_11, %c0_12] : memref<16x512xf32, #tpu.memory_space<vmem>>, vector<16x512xf32>
      tpu.vector_store %arg8[%c0_11, %c0_12], %13 {strides = array<i32>} : memref<16x512xf32, #tpu.memory_space<vmem>>, vector<16x512xf32>,
    } else {
    }
    %c0 = arith.constant 0 : index
    %c0_1 = arith.constant 0 : index
    %3 = vector.load %arg8[%c0, %c0_1] : memref<16x512xf32, #tpu.memory_space<vmem>>, vector<16x512xf32>
    %c0_2 = arith.constant 0 : index
    %c0_3 = arith.constant 0 : index
    %4 = vector.load %arg2[%c0_2, %c0_3] : memref<16x32xf32, #tpu.memory_space<vmem>>, vector<16x32xf32>
    %5 = arith.truncf %4 : vector<16x32xf32> to vector<16x32xbf16>
    %c0_4 = arith.constant 0 : index
    %c0_5 = arith.constant 0 : index
    %6 = vector.load %arg3[%c0_4, %c0_5] : memref<32x512xbf16, #tpu.memory_space<vmem>>, vector<32x512xbf16>
    %cst = arith.constant dense<0.000000e+00> : vector<16x512xf32>
    %7 = tpu.matmul %5, %6, %cst {dimension_numbers = #tpu.dot_dimension_numbers<[1], [0], [0], [1], [0, 0, 1, 1], [], []>} : vector<16x32xbf16>, vector<32x512xbf16>, vector<16x512xf32> -> vector<16x512xf32>
    %8 = arith.addf %3, %7 : vector<16x512xf32>
    %c0_6 = arith.constant 0 : index
    %c0_7 = arith.constant 0 : index
    %9 = vector.load %arg8[%c0_6, %c0_7] : memref<16x512xf32, #tpu.memory_space<vmem>>, vector<16x512xf32>
    tpu.vector_store %arg8[%c0_6, %c0_7], %8 {strides = array<i32>} : memref<16x512xf32, #tpu.memory_space<vmem>>, vector<16x512xf32>,
    %c0_i32_8 = arith.constant 0 : i32
    %10 = arith.cmpi eq, %arg1, %c0_i32_8 : i32
    %11 = arith.extui %10 : i1 to i32
    %c0_i32_9 = arith.constant 0 : i32
    %12 = arith.cmpi ne, %11, %c0_i32_9 : i32
    scf.if %12 {
      %c0_10 = arith.constant 0 : index
      %c0_11 = arith.constant 0 : index
      %13 = vector.load %arg8[%c0_10, %c0_11] : memref<16x512xf32, #tpu.memory_space<vmem>>, vector<16x512xf32>
      %c0_12 = arith.constant 0 : index
      %c0_13 = arith.constant 0 : index
      %14 = vector.load %arg4[%c0_12, %c0_13] : memref<1x512xf32, #tpu.memory_space<vmem>>, vector<1x512xf32>
      %15 = vector.broadcast %14 : vector<1x512xf32> to vector<16x512xf32>
      %16 = arith.addf %13, %15 : vector<16x512xf32>
      %cst_14 = arith.constant 0.000000e+00 : f32
      %17 = vector.broadcast %cst_14 : f32 to vector<16x512xf32>
      %18 = arith.maximumf %16, %17 : vector<16x512xf32>
      %19 = arith.truncf %18 : vector<16x512xf32> to vector<16x512xbf16>
      %c0_15 = arith.constant 0 : index
      %c0_16 = arith.constant 0 : index
      %20 = vector.load %arg5[%c0_15, %c0_16] : memref<512x128xbf16, #tpu.memory_space<vmem>>, vector<512x128xbf16>
      %cst_17 = arith.constant dense<0.000000e+00> : vector<16x128xf32>
      %21 = tpu.matmul %19, %20, %cst_17 {dimension_numbers = #tpu.dot_dimension_numbers<[1], [0], [0], [1], [0, 0, 1, 1], [], []>} : vector<16x512xbf16>, vector<512x128xbf16>, vector<16x128xf32> -> vector<16x128xf32>
      %c0_18 = arith.constant 0 : index
      %c0_19 = arith.constant 0 : index
      %22 = vector.load %arg6[%c0_18, %c0_19] : memref<1x128xf32, #tpu.memory_space<vmem>>, vector<1x128xf32>
      %23 = vector.broadcast %22 : vector<1x128xf32> to vector<16x128xf32>
      %24 = arith.addf %21, %23 : vector<16x128xf32>
      %c0_20 = arith.constant 0 : index
      %c0_21 = arith.constant 0 : index
      %25 = vector.load %arg7[%c0_20, %c0_21] : memref<16x128xf32, #tpu.memory_space<vmem>>, vector<16x128xf32>
      tpu.vector_store %arg7[%c0_20, %c0_21], %24 {strides = array<i32>} : memref<16x128xf32, #tpu.memory_space<vmem>>, vector<16x128xf32>,
    } else {
    }
    return
  }
  func.func @transform_0(%arg0: i32, %arg1: i32) -> (i32, i32) {
    %c0_i32 = arith.constant 0 : i32
    return %arg0, %arg1 : i32, i32
  }
  func.func @transform_1(%arg0: i32, %arg1: i32) -> (i32, i32) {
    %c0_i32 = arith.constant 0 : i32
    %c0_i32_0 = arith.constant 0 : i32
    return %arg1, %c0_i32 : i32, i32
  }
  func.func @transform_2(%arg0: i32, %arg1: i32) -> (i32, i32) {
    %c0_i32 = arith.constant 0 : i32
    %c0_i32_0 = arith.constant 0 : i32
    %c0_i32_1 = arith.constant 0 : i32
    return %c0_i32, %c0_i32_0 : i32, i32
  }
  func.func @transform_3(%arg0: i32, %arg1: i32) -> (i32, i32) {
    %c0_i32 = arith.constant 0 : i32
    %c0_i32_0 = arith.constant 0 : i32
    %c0_i32_1 = arith.constant 0 : i32
    return %c0_i32, %c0_i32_0 : i32, i32
  }
  func.func @transform_4(%arg0: i32, %arg1: i32) -> (i32, i32) {
    %c0_i32 = arith.constant 0 : i32
    %c0_i32_0 = arith.constant 0 : i32
    %c0_i32_1 = arith.constant 0 : i32
    return %c0_i32, %c0_i32_0 : i32, i32
  }
  func.func @transform_5(%arg0: i32, %arg1: i32) -> (i32, i32) {
    %c0_i32 = arith.constant 0 : i32
    %c0_i32_0 = arith.constant 0 : i32
    return %arg0, %c0_i32 : i32, i32
  }
}

</mosaic_0001>

<bundles_post_ra>
// kernel: _classifier_forward.1
= control target key start
LH: loop header
LB: loop body
LE: loop exit
PB: predicated region body
PF: predicated region fallthrough
CT: control target
= control target key end

     0   :  { %10 = vsyncpa [#allocation4], 0  ;;  %s888_s0 = inlined_call_operand.vmem [shape: f32[16,32], index: 0, kind: input, shape index: {}]   ;;  %s889_s1 = inlined_call_operand.hbm [shape: bf16[32,512], index: 1, kind: input, shape index: {}]   ;;  %s890_s2 = inlined_call_operand.vmem [shape: f32[1,512], index: 2, kind: input, shape index: {}]   ;;  %s891_s3 = inlined_call_operand.hbm [shape: bf16[512,128], index: 3, kind: input, shape index: {}]   ;;  %s892_s4 = inlined_call_operand.vmem [shape: f32[1,128], index: 4, kind: input, shape index: {}]   ;;  %s893_s5 = inlined_call_operand.vmem [shape: f32[16,128], index: 5, kind: output, shape index: {}]  }
   0x1   :  { %s18_s20 = sshll.u32 %s889_s1, 4  ;;  %s19_s20 = int_to_ptr.hbm [resolvable:$true] %s18_s20 }
   0x2   :  { %11 = vsyncpa [#allocation6], 0  ;;  %s828_s21 = smov [#allocation3]   ;;  %s33_s25 = sshll.u32 %s891_s3, 4  ;;  %s34_s25 = int_to_ptr.hbm [resolvable:$true] %s33_s25 }
   0x3   :  { %s20_s22 = sshll.u32 %s828_s21, 4  ;;  %s829_s26 = smov 256   ;;  %s21_s22 = int_to_ptr.vmem [resolvable:$true] %s20_s22 }
   0x4   :  { %s830_s27 = smov 16   ;;  %s831_s28 = smov [#allocation5]  }
   0x5   :  { %26 = dma.hbm_to_vmem [thread:$0]  %s19_s20, 1024, %s21_s22, [#allocation4], %s829_s26, %s829_s26, %s830_s27  }
   0x6   :  { %s35_s29 = sshll.u32 %s831_s28, 4  ;;  %s832_s30 = smov 64   ;;  %s36_s29 = int_to_ptr.vmem [resolvable:$true] %s35_s29 }
   0x7   :  { %s833_s6 = smov 4  }
   0x8   :  { %41 = dma.hbm_to_vmem [thread:$0]  %s34_s25, 4096, %s36_s29, [#allocation6], %s832_s30, %s832_s30, %s833_s6  }
   0x9   :  { %824 = dma.done.wait [#allocation4], 1024  }
   0xa   :  { %825 = vsyncadd [#allocation4], 4294966272 }
   0xb   :  { %826 = dma.done.wait [#allocation6], 4096  }
   0xc   :  { %827 = vsyncadd [#allocation6], 4294963200  ;;  %v583_v0 = vld [vmem:[#allocation3 + $0x20] sm:$0xf]  ;;  %v735_v1 = vld [vmem:[#allocation3 + $0x2c] sm:$0xf0] }
   0xd   :  { %v733_v2 = vld [vmem:[#allocation3 + $0x24] sm:$0xf]  ;;  %v584_v3 = vor.u32 %v735_v1, %v583_v0  ;;  %v585_v4 = vld [vmem:[#allocation3 + $0x30] sm:$0xf0]  ;;  %v591_v5 = vld [vmem:[#allocation3 + $0x28] sm:$0xf] }
   0xe   :  { %v736_v6 = vld [vmem:[#allocation3 + $0x34] sm:$0xf0]  ;;  %v588_v7 = vor.u32 %v733_v2, %v585_v4  ;;  %v734_v9 = vld [vmem:[#allocation3 + $0x2c] sm:$0xf]  ;;  %v593_v10 = vld [vmem:[#allocation3 + $0x38] sm:$0xf0] }
   0xf   :  { %v592_v8 = vor.u32 %v736_v6, %v591_v5  ;;  %v567_v11 = vld [vmem:[#allocation3] sm:$0xf]  ;;  %134 = vmatpush.bf16.msra.mxu0 %v584_v3  ;;  %v596_v12 = vor.u32 %v734_v9, %v593_v10  ;;  %v731_v13 = vld [vmem:[#allocation3 + $0xc] sm:$0xf0]  ;;  %v729_v14 = vld [vmem:[#allocation3 + $0x4] sm:$0xf] }
  0x10   :  { %v569_v15 = vld [vmem:[#allocation3 + $0x10] sm:$0xf0]  ;;  %148 = vmatpush.bf16.msra.mxu1 %v588_v7  ;;  %v568_v16 = vor.u32 %v731_v13, %v567_v11  ;;  %v575_v18 = vld [vmem:[#allocation3 + $0x8] sm:$0xf]  ;;  %v732_v19 = vld [vmem:[#allocation3 + $0x14] sm:$0xf0] }
  0x11   :  { %162 = vmatpush.bf16.msra.mxu2 %v592_v8  ;;  %v572_v17 = vor.u32 %v729_v14, %v569_v15  ;;  %v730_v20 = vld [vmem:[#allocation3 + $0xc] sm:$0xf]  ;;  %176 = vmatpush.bf16.msra.mxu3 %v596_v12  ;;  %v576_v21 = vor.u32 %v732_v19, %v575_v18  ;;  %v577_v22 = vld [vmem:[#allocation3 + $0x18] sm:$0xf0]  ;;  %v73_v23 = vld [vmem:[%s888_s0] sm:$0xff]  ;;  %vm124_vm0 = vcmask 261120  }
  0x12   :  { %v74_v24 = vld [vmem:[%s888_s0 + $0x8] sm:$0xff]  ;;  %v580_v25 = vor.u32 %v730_v20, %v577_v22  ;;  %v744_v27 = vld [vmem:[#allocation5 + $0x38] sm:$0xff]  ;;  %v743_v30 = vld [vmem:[#allocation5 + $0x30] sm:$0xff] }
  0x13   :  { %v75_v26 = vpack.c.bf16 %v74_v24, %v73_v23  ;;  %v752_v28 = vld [vmem:[#allocation5 + $0x78] sm:$0xff]  ;;  %135 = vmatpush.bf16.msra.mxu0 %v568_v16  ;;  %v751_v32 = vld [vmem:[#allocation5 + $0x70] sm:$0xff]  ;;  %v742_v34 = vld [vmem:[#allocation5 + $0x28] sm:$0xff] }
  0x14   :  { %149 = vmatpush.bf16.msra.mxu1 %v572_v17  ;;  %v760_v29 = vld [vmem:[#allocation5 + $0xb8] sm:$0xff]  ;;  %v759_v33 = vld [vmem:[#allocation5 + $0xb0] sm:$0xff]  ;;  %v750_v36 = vld [vmem:[#allocation5 + $0x68] sm:$0xff] }
  0x15   :  { %163 = vmatpush.bf16.msra.mxu2 %v576_v21  ;;  %177 = vmatpush.bf16.msra.mxu3 %v580_v25  ;;  %v768_v31 = vld [vmem:[#allocation5 + $0xf8] sm:$0xff]  ;;  %v767_v35 = vld [vmem:[#allocation5 + $0xf0] sm:$0xff]  ;;  %v758_v37 = vld [vmem:[#allocation5 + $0xa8] sm:$0xff] }
  0x16   :  { %597 = vmatmul.msk.bf16.vlgmr.msra.gmra.mxu0 %vm124_vm0, %v75_v26  ;;  %v741_v38 = vld [vmem:[#allocation5 + $0x20] sm:$0xff]  ;;  %v766_v39 = vld [vmem:[#allocation5 + $0xe8] sm:$0xff]  ;;  %v740_v41 = vld [vmem:[#allocation5 + $0x18] sm:$0xff] }
  0x17   :  { %501 = vmatpush.bf16.msrb.mxu0 %v744_v27  ;;  %598 = vmatmul.msk.bf16.vlgmr.msra.gmra.mxu1 %vm124_vm0, %v75_v26  ;;  %v749_v40 = vld [vmem:[#allocation5 + $0x60] sm:$0xff]  ;;  %v748_v42 = vld [vmem:[#allocation5 + $0x58] sm:$0xff]  ;;  %v739_v45 = vld [vmem:[#allocation5 + $0x10] sm:$0xff] }
  0x18   :  { %515 = vmatpush.bf16.msrb.mxu1 %v752_v28  ;;  %599 = vmatmul.msk.bf16.vlgmr.msra.gmra.mxu2 %vm124_vm0, %v75_v26  ;;  %v757_v43 = vld [vmem:[#allocation5 + $0xa0] sm:$0xff]  ;;  %v747_v46 = vld [vmem:[#allocation5 + $0x50] sm:$0xff]  ;;  %v756_v47 = vld [vmem:[#allocation5 + $0x98] sm:$0xff] }
  0x19   :  { %600 = vmatmul.msk.bf16.vlgmr.msra.gmra.mxu3 %vm124_vm0, %v75_v26  ;;  %529 = vmatpush.bf16.msrb.mxu2 %v760_v29  ;;  %v765_v44 = vld [vmem:[#allocation5 + $0xe0] sm:$0xff]  ;;  %v764_v48 = vld [vmem:[#allocation5 + $0xd8] sm:$0xff]  ;;  %v738_v49 = vld [vmem:[#allocation5 + $0x8] sm:$0xff] }
  0x1a   :  { %543 = vmatpush.bf16.msrb.mxu3 %v768_v31  ;;  %v746_v50 = vld [vmem:[#allocation5 + $0x48] sm:$0xff]  ;;  %v755_v51 = vld [vmem:[#allocation5 + $0x90] sm:$0xff]  ;;  %v737_v53 = vld [vmem:[#allocation5] sm:$0xff] }
  0x1b   :  { %502 = vmatpush.bf16.msrb.mxu0 %v743_v30  ;;  %v763_v52 = vld [vmem:[#allocation5 + $0xd0] sm:$0xff]  ;;  %v745_v54 = vld [vmem:[#allocation5 + $0x40] sm:$0xff]  ;;  %v754_v55 = vld [vmem:[#allocation5 + $0x88] sm:$0xff] }
  0x1c   :  { %516 = vmatpush.bf16.msrb.mxu1 %v751_v32  ;;  %v762_v56 = vld [vmem:[#allocation5 + $0xc8] sm:$0xff]  ;;  %v753_v57 = vld [vmem:[#allocation5 + $0x80] sm:$0xff] }
  0x1d   :  { %530 = vmatpush.bf16.msrb.mxu2 %v759_v33  ;;  %v761_v58 = vld [vmem:[#allocation5 + $0xc0] sm:$0xff] }
  0x1e   :  { %544 = vmatpush.bf16.msrb.mxu3 %v767_v35  ;;  %v211_v60 = vld [vmem:[%s890_s2] sm:$0xf] }
  0x1f   :  { %503 = vmatpush.bf16.msrb.mxu0 %v742_v34  ;;  %v213_v61 = vperm.slane %v211_v60, 0  ;;  %v214_v63 = vperm.slane %v211_v60, 1  ;;  %v215_v9 = vperm.slane %v211_v60, 2  ;;  %v216_v11 = vperm.slane %v211_v60, 3  ;;  %v775_v29 = vld [vmem:[%s892_s4] ss:$0 sm:$0xff] }
  0x20   :  { %517 = vmatpush.bf16.msrb.mxu1 %v750_v36 }
  0x21   :  { %531 = vmatpush.bf16.msrb.mxu2 %v758_v37 }
  0x22   :  { %545 = vmatpush.bf16.msrb.mxu3 %v766_v39 }
  0x23   :  { %504 = vmatpush.bf16.msrb.mxu0 %v741_v38 }
  0x24   :  { %518 = vmatpush.bf16.msrb.mxu1 %v749_v40 }
  0x25   :  { %532 = vmatpush.bf16.msrb.mxu2 %v757_v43 }
  0x26   :  { %546 = vmatpush.bf16.msrb.mxu3 %v765_v44 }
  0x27   :  { %505 = vmatpush.bf16.msrb.mxu0 %v740_v41 }
  0x28   :  { %519 = vmatpush.bf16.msrb.mxu1 %v748_v42 }
  0x29   :  { %533 = vmatpush.bf16.msrb.mxu2 %v756_v47 }
  0x2a   :  { %547 = vmatpush.bf16.msrb.mxu3 %v764_v48 }
  0x2b   :  { %506 = vmatpush.bf16.msrb.mxu0 %v739_v45 }
  0x2c   :  { %520 = vmatpush.bf16.msrb.mxu1 %v747_v46 }
  0x2d   :  { %534 = vmatpush.bf16.msrb.mxu2 %v755_v51 }
  0x2e   :  { %548 = vmatpush.bf16.msrb.mxu3 %v763_v52 }
  0x2f   :  { %507 = vmatpush.bf16.msrb.mxu0 %v738_v49 }
  0x30   :  { %521 = vmatpush.bf16.msrb.mxu1 %v746_v50 }
  0x31   :  { %535 = vmatpush.bf16.msrb.mxu2 %v754_v55 }
  0x32   :  { %549 = vmatpush.bf16.msrb.mxu3 %v762_v56 }
  0x33   :  { %508 = vmatpush.bf16.msrb.mxu0 %v737_v53 }
  0x34   :  { %522 = vmatpush.bf16.msrb.mxu1 %v745_v54 }
  0x35   :  { %536 = vmatpush.bf16.msrb.mxu2 %v753_v57 }
  0x36   :  { %550 = vmatpush.bf16.msrb.mxu3 %v761_v58 }
  0x93   :  { %v137_v59 = vpop.f32.mrf.mxu0 }
  0x94   :  { %v151_v62 = vpop.f32.mrf.mxu1  ;;  %v221_v0 = vadd.f32 %v213_v61, %v137_v59 }
  0x95   :  { %v222_v1 = vadd.f32 %v214_v63, %v151_v62 }
  0x96   :  { %v229_v5 = vmax.f32 %v221_v0, 0.0 }
  0x97   :  { %v230_v8 = vmax.f32 %v222_v1, 0.0 }
  0x9b   :  { %v165_v2 = vpop.f32.mrf.mxu2  ;;  %v139_v4 = vpop.f32.mrf.mxu0 }
  0x9c   :  { %v179_v3 = vpop.f32.mrf.mxu3  ;;  %v225_v6 = vadd.f32 %v213_v61, %v139_v4  ;;  %v153_v7 = vpop.f32.mrf.mxu1  ;;  %v223_v15 = vadd.f32 %v215_v9, %v165_v2 }
  0x9d   :  { %v226_v10 = vadd.f32 %v214_v63, %v153_v7  ;;  %v224_v17 = vadd.f32 %v216_v11, %v179_v3 }
  0x9e   :  { %v233_v12 = vmax.f32 %v225_v6, 0.0  ;;  %v231_v22 = vmax.f32 %v223_v15, 0.0 }
  0x9f   :  { %v234_v13 = vmax.f32 %v226_v10, 0.0  ;;  %v232_v24 = vmax.f32 %v224_v17, 0.0 }
  0xa0   :  { %v237_v14 = vpack.c.bf16 %v233_v12, %v229_v5 }
  0xa1   :  { %v238_v16 = vpack.c.bf16 %v234_v13, %v230_v8 }
  0xa2   :  { %509 = vmatmul.bf16.vlgmr.msrb.gmra.mxu0 %v237_v14 }
  0xa3   :  { %v167_v18 = vpop.f32.mrf.mxu2  ;;  %523 = vmatmul.bf16.vlgmr.msrb.gmra.mxu1 %v238_v16 }
  0xa4   :  { %v227_v19 = vadd.f32 %v215_v9, %v167_v18  ;;  %v181_v20 = vpop.f32.mrf.mxu3 }
  0xa5   :  { %v228_v21 = vadd.f32 %v216_v11, %v181_v20 }
  0xa6   :  { %v235_v23 = vmax.f32 %v227_v19, 0.0 }
  0xa7   :  { %v236_v25 = vmax.f32 %v228_v21, 0.0 }
  0xa8   :  { %v239_v26 = vpack.c.bf16 %v235_v23, %v231_v22 }
  0xa9   :  { %v240_v27 = vpack.c.bf16 %v236_v25, %v232_v24 }
  0xaa   :  { %537 = vmatmul.bf16.vlgmr.msrb.gmra.mxu2 %v239_v26 }
  0xab   :  { %551 = vmatmul.bf16.vlgmr.msrb.gmra.mxu3 %v240_v27 }
 0x11f   :  { %v510_v28 = vpop.f32.mrf.mxu0 }
 0x120   :  { %v511_v30 = vadd.f32 %v775_v29, %v510_v28  ;;  %v524_v31 = vpop.f32.mrf.mxu1 }
 0x122   :  { %v525_v32 = vadd.f32 %v524_v31, %v511_v30 }
 0x127   :  { %v512_v33 = vpop.f32.mrf.mxu0 }
 0x128   :  { %v513_v37 = vadd.f32 %v775_v29, %v512_v33  ;;  %v526_v39 = vpop.f32.mrf.mxu1 }
 0x12a   :  { %v527_v40 = vadd.f32 %v526_v39, %v513_v37 }
 0x12d   :  { %v538_v34 = vpop.f32.mrf.mxu2 }
 0x12e   :  { %v539_v35 = vadd.f32 %v538_v34, %v525_v32  ;;  %v552_v36 = vpop.f32.mrf.mxu3 }
 0x130   :  { %v553_v38 = vadd.f32 %v552_v36, %v539_v35 }
 0x132   :  { %557 = vst [vmem:[%s893_s5] sm:$0xff] %v553_v38 }
 0x135   :  { %v540_v41 = vpop.f32.mrf.mxu2 }
 0x136   :  { %v541_v42 = vadd.f32 %v540_v41, %v527_v40  ;;  %v554_v43 = vpop.f32.mrf.mxu3 }
 0x138   :  { %v555_v44 = vadd.f32 %v554_v43, %v541_v42 }
 0x13a   :  { %558 = vst [vmem:[%s893_s5 + $0x8] sm:$0xff] %v555_v44 }
 0x13b   :  { %563 = vsyncpa [#allocation4], 1 }
 0x13c   :  { %564 = vsyncpa [#allocation6], 1 }

</bundles_post_ra>
